<compile_context>
chip_gen: v7x
topology: tpu7x:2x2x1
jax: 0.10.0
libtpu: 0.0.40
codegen_flags: <defaults>
</compile_context>

<pallas_src>
import jax
import jax.numpy as jnp
from jax.experimental import pallas as pl
from jax.experimental.pallas import tpu as pltpu


def _round_up(x, m):
    return ((x + m - 1) // m) * m


def _scaled_conv_kernel(w_ref, x_ref, o_ref):
    # w_ref: (Cout, K_pad) bf16 -- scale and bias already folded in
    # x_ref: (K_pad, tm)   bf16 -- im2col tile of one batch image (lane axis = HW)
    # o_ref: (Cout, tm)    f32  -- lane-dense, NCHW-ordered output tile
    o_ref[...] = jnp.dot(w_ref[...], x_ref[...],
                         preferred_element_type=jnp.float32)


def scale_conv2d(x_nchw, weight_oihw, bias, scale, *, pad=1, tm=1024):
    """Forward of Scale(Conv2d(...), scale): conv(x) * scale.  NCHW in/out."""
    N, Cin, H, W = x_nchw.shape
    Cout, Cin_w, KH, KW = weight_oihw.shape
    assert Cin == Cin_w

    K = KH * KW * Cin
    HW = H * W

    # ---- tile sizing: big lane tiles, capped at 2048 (vreg pressure), ----
    # ---- clamped to the (128-rounded) spatial extent.                  ----
    tm = max(128, min(_round_up(tm, 128), 2048, _round_up(HW, 128)))
    grid_hw = pl.cdiv(HW, tm)
    HW_pad = grid_hw * tm

    # ---- fold the Scale buffer into weights/bias in f32 (tiny arrays) ----
    w_scaled = weight_oihw.astype(jnp.float32) * scale
    b_scaled = bias.astype(jnp.float32) * scale

    # (Cout, K) with K ordered (kh, kw, cin); append bias as an extra K column.
    w_cols = w_scaled.transpose(0, 2, 3, 1).reshape(Cout, K)
    w_cols = jnp.concatenate([w_cols, b_scaled.reshape(Cout, 1)], axis=1)
    K_pad = _round_up(K + 1, 16)  # bf16 sublane packing
    w_cols = jnp.pad(w_cols, ((0, 0), (0, K_pad - (K + 1)))).astype(jnp.bfloat16)

    # ---- glue: per-batch im2col in bf16, lane axis = H*W (NCHW-compatible) ----
    xb = x_nchw.astype(jnp.bfloat16)
    xp = jnp.pad(xb, ((0, 0), (0, 0), (pad, pad), (pad, pad)))
    views = [xp[:, :, dy:dy + H, dx:dx + W]            # each (N, Cin, H, W)
             for dy in range(KH) for dx in range(KW)]
    cols = jnp.stack(views, axis=1)                    # (N, KK, Cin, H, W)
    cols = cols.reshape(N, K, HW)                      # K ordered (kh, kw, cin)
    ones_row = jnp.ones((N, 1, HW), dtype=jnp.bfloat16)   # bias row
    cols = jnp.concatenate([cols, ones_row], axis=1)   # (N, K+1, HW)
    cols = jnp.pad(cols, ((0, 0), (0, K_pad - (K + 1)), (0, HW_pad - HW)))

    bytes_accessed = (N * K_pad * HW_pad * 2          # im2col (bf16)
                      + Cout * K_pad * 2              # weights (bf16)
                      + N * Cout * HW_pad * 4)        # output (f32)

    # ---- hot path: fused matmul (+ folded scale & bias) in Pallas ----
    out = pl.pallas_call(
        _scaled_conv_kernel,
        out_shape=jax.ShapeDtypeStruct((N, Cout, HW_pad), jnp.float32),
        grid_spec=pltpu.PrefetchScalarGridSpec(
            num_scalar_prefetch=0,
            grid=(N, grid_hw),
            in_specs=[
                pl.BlockSpec((Cout, K_pad), lambda n, m: (0, 0)),      # weights
                pl.BlockSpec((None, K_pad, tm), lambda n, m: (n, 0, m)),  # cols
            ],
            out_specs=pl.BlockSpec((None, Cout, tm), lambda n, m: (n, 0, m)),
        ),
        compiler_params=pltpu.CompilerParams(
            dimension_semantics=("parallel", "parallel"),
        ),
        cost_estimate=pl.CostEstimate(
            flops=2 * N * HW_pad * K_pad * Cout,
            transcendentals=0,
            bytes_accessed=bytes_accessed,
        ),
    )(w_cols, cols)

    # (N, Cout, HW_pad) -> (N, Cout, H, W): slice off lane padding, reshape only
    # (no transpose -- the kernel output is already NCHW-ordered).
    return out[:, :, :HW].reshape(N, Cout, H, W)


if __name__ == "__main__":
    key = jax.random.PRNGKey(0)
    kx, kw, kb = jax.random.split(key, 3)

    N, Cin, Cout, H, W = 2, 4, 8, 16, 16
    scale = 0.5  # the buffer registered in Scale.__init__

    x = jax.random.normal(kx, (N, Cin, H, W), dtype=jnp.float32)
    weight = jax.random.normal(kw, (Cout, Cin, 3, 3), dtype=jnp.float32) * 0.1
    bias = jax.random.normal(kb, (Cout,), dtype=jnp.float32) * 0.1

    out = scale_conv2d(x, weight, bias, scale, pad=1)
    out = jax.block_until_ready(out)

    # Reference: conv2d in plain JAX, then * scale (Scale.forward semantics).
    ref = jax.lax.conv_general_dilated(
        x, weight, window_strides=(1, 1), padding=((1, 1), (1, 1)),
        dimension_numbers=("NCHW", "OIHW", "NCHW"),
    ) + bias.reshape(1, Cout, 1, 1)
    ref = ref * scale

    assert out.shape == (N, Cout, H, W)
    assert jnp.allclose(out, ref, atol=2e-2, rtol=2e-2)
    print("KERNEL_OK")
</pallas_src>

<mosaic_0001>
module attributes {stable_mosaic.version = 11 : i64} {
  func.func @_scaled_conv_kernel(%arg0: i32, %arg1: i32, %arg2: memref<8x48xbf16, #tpu.memory_space<vmem>>, %arg3: memref<1x48x256xbf16, #tpu.memory_space<vmem>>, %arg4: memref<1x8x256xf32, #tpu.memory_space<vmem>>) attributes {dimension_semantics = [#tpu.dimension_semantics<parallel>, #tpu.dimension_semantics<parallel>], iteration_bounds = array<i64: 2, 1>, scalar_prefetch = 0 : i64, scratch_operands = 0 : i64, tpu.core_type = #tpu.core_type<tc>, window_params = [{pipeline_mode = #tpu.pipeline_mode<synchronous>, transform_indices = @transform_0, window_bounds = array<i64: 8, 48>}, {transform_indices = @transform_1, window_bounds = array<i64: 1, 48, 256>}, {transform_indices = @transform_2, window_bounds = array<i64: 1, 8, 256>}]} {
    %c0 = arith.constant 0 : index
    %c0_0 = arith.constant 0 : index
    %0 = vector.load %arg2[%c0, %c0_0] : memref<8x48xbf16, #tpu.memory_space<vmem>>, vector<8x48xbf16>
    %c0_1 = arith.constant 0 : index
    %c0_2 = arith.constant 0 : index
    %c0_3 = arith.constant 0 : index
    %1 = vector.load %arg3[%c0_1, %c0_2, %c0_3] : memref<1x48x256xbf16, #tpu.memory_space<vmem>>, vector<1x48x256xbf16>
    %2 = vector.shape_cast %1 : vector<1x48x256xbf16> to vector<48x256xbf16>
    %cst = arith.constant dense<0.000000e+00> : vector<8x256xf32>
    %3 = tpu.matmul %0, %2, %cst {dimension_numbers = #tpu.dot_dimension_numbers<[1], [0], [0], [1], [0, 0, 1, 1], [], []>} : vector<8x48xbf16>, vector<48x256xbf16>, vector<8x256xf32> -> vector<8x256xf32>
    %c0_4 = arith.constant 0 : index
    %c0_5 = arith.constant 0 : index
    %c0_6 = arith.constant 0 : index
    %4 = vector.load %arg4[%c0_4, %c0_5, %c0_6] : memref<1x8x256xf32, #tpu.memory_space<vmem>>, vector<1x8x256xf32>
    %5 = vector.shape_cast %4 : vector<1x8x256xf32> to vector<8x256xf32>
    %6 = vector.shape_cast %3 : vector<8x256xf32> to vector<1x8x256xf32>
    tpu.vector_store %arg4[%c0_4, %c0_5, %c0_6], %6 {strides = array<i32>} : memref<1x8x256xf32, #tpu.memory_space<vmem>>, vector<1x8x256xf32>,
    return
  }
  func.func @transform_0(%arg0: i32, %arg1: i32) -> (i32, i32) {
    %c0_i32 = arith.constant 0 : i32
    %c0_i32_0 = arith.constant 0 : i32
    %c0_i32_1 = arith.constant 0 : i32
    return %c0_i32, %c0_i32_0 : i32, i32
  }
  func.func @transform_1(%arg0: i32, %arg1: i32) -> (i32, i32, i32) {
    %c0_i32 = arith.constant 0 : i32
    %c0_i32_0 = arith.constant 0 : i32
    return %arg0, %c0_i32, %arg1 : i32, i32, i32
  }
  func.func @transform_2(%arg0: i32, %arg1: i32) -> (i32, i32, i32) {
    %c0_i32 = arith.constant 0 : i32
    %c0_i32_0 = arith.constant 0 : i32
    return %arg0, %c0_i32, %arg1 : i32, i32, i32
  }
}

</mosaic_0001>

<bundles_post_ra>
// kernel: tpu_custom_call.1
= control target key start
LH: loop header
LB: loop body
LE: loop exit
PB: predicated region body
PF: predicated region fallthrough
CT: control target
= control target key end

     0   :  { %7 = vsyncpa [#allocation3], 0  ;;  %s890_s0 = inlined_call_operand.hbm [shape: bf16[8,48], index: 0, kind: input, shape index: {}]   ;;  %s891_s1 = inlined_call_operand.hbm [shape: bf16[2,48,256], index: 1, kind: input, shape index: {}]   ;;  %s892_s2 = inlined_call_operand.hbm [shape: f32[2,8,256], index: 2, kind: output, shape index: {}]  }
   0x1   :  { %8 = vsyncpa [#allocation6], 0 }
   0x2   :  { %10 = vsyncpa [#allocation6 + $0x1], 0 }
   0x3   :  { %11 = vsyncpa [#allocation4], 0 }
   0x4   :  { %13 = vsyncpa [#allocation4 + $0x1], 0  ;;  %s670_s9 = smov 0   ;;  %s672_s10 = smov 0  }
   0x5   :  { %s674_s11 = smov 0   ;;  %s676_s12 = smov 0  }
   0x6   :  { %s678_s13 = smov 0   ;;  %s680_s14 = smov 0  }
   0x7 LB: > { %s393_s15 = sadd.s32 4294967295, %s647_s14   ;;  %s394_s16 = sadd.s32 4294967294, %s647_s14   ;;  %s647_s14 = sphi %s680_s14, %s19_s14   ;;  %s643_s13 = sphi %s678_s13, %s920_s13   ;;  %s639_s12 = sphi %s676_s12, %s919_s12   ;;  %s635_s11 = sphi %s674_s11, %s918_s11   ;;  %s631_s10 = sphi %s672_s10, %s917_s10   ;;  %s627_s9 = sphi %s670_s9, %s916_s9  }
   0x8   : > { %s61_s17 = sadd.s32 1, %s635_s11  ;;  %p68_p0 = scmp.ne.s32.totalorder %s635_s11, %s631_s10 }
   0x9   : > { %p69_p1 = scmp.eq.s32.totalorder %s647_s14, 0  ;;  %p74_p2 = scmp.ne.s32.totalorder %s631_s10, %s627_s9 }
   0xa   : > { %p708_p3 = scmp.eq.s32.totalorder %s393_s15, 0  ;;  %p100_p4 = scmp.eq.s32.totalorder %s393_s15, 1 }
   0xb   : > { %p712_p5 = por %p69_p1, %p68_p0  ;;  %p106_p6 = scmp.eq.s32.totalorder %s394_s16, 1 }
   0xc   : > { %s899_s18 = scalar_select %p708_p3, 1, 0 }
   0xd   : > { %p718_p7 = por %p708_p3, %p74_p2  ;;  %p722_p8 = por %p100_p4, %p68_p0 }
   0xe   : > { %p726_p9 = por %p106_p6, %p74_p2  ;;  %p395_p10 = scmp.ge.s32.totalorder %s647_s14, 1 }
   0xf   : > { %s901_s20 = scalar_select %p718_p7, 1, 0 }
  0x10   : > { %s902_s21 = scalar_select %p722_p8, 1, 0 }
  0x11   : > { %s903_s22 = scalar_select %p726_p9, 1, 0 }
  0x12   : > { %p113_p11 = scmp.lt.s32.totalorder %s647_s14, 3  ;;  %s649_s24 = smov [#allocation2]  }
  0x13   : > { %s126_s25 = sshll.u32 %s649_s24, 4  ;;  %p439_p1 = scmp.lt.s32.totalorder %s647_s14, 2  ;;  %s127_s25 = int_to_ptr.vmem [resolvable:$true] %s126_s25 }
  0x14   : > { %p733_p13 = pnand %p395_p10, %p113_p11  ;;  %s31_s28 = sadd.s32 1, %s643_s13 }
  0x15   : > { %p742_p4 = pnand %p439_p1, %p712_p5  ;;  %p753_p6 = scmp.ge.s32.totalorder %s31_s28, 2 }
  0x16   : > { %s904_s23 = scalar_select %p733_p13, 1, 0 }
  0x17   : > { %p426_p0 = pneg %p733_p13  ;;  %s137_s30 = sand.u32 1, %s635_s11  }
  0x18   : > { %s905_s26 = scalar_select %p742_p4, 1, 0 }
  0x19   : > { %p748_p2 = pnand %p426_p0, %p708_p3  ;;  %s503_s5 = scalar_lea.hbm %s890_s0, 64 }
  0x1a   : > { %s907_s29 = scalar_select %p753_p6, 1, 0 }
  0x1b   : > { %p504_p5 = scmp.ne.s32.totalorder %s890_s0, %s503_s5  ;;  %p505_p10 = pneg %p748_p2 }
  0x1c   : > { %p510_p0 = scmp.lt.u32.totalorder %s503_s5, %s890_s0 }
  0x1d   : > { %p506_p11 = pnand %p505_p10, %p504_p5 }
  0x1f   : > { %p507_p1 = pneg %p506_p11 }
  0x21   : > { %p512_p12 = pnand %p510_p0, %p507_p1 }
  0x23   : > { %515 = shalt.err (!%p512_p12)
}
  0x24   : > { %s516_s16 = scalar_lea.vmem %s127_s25, 64  ;;  %p524_p3 = scmp.lt.s32.totalorder %s127_s25, %s127_s25 }
  0x25   : > { %p517_p9 = scmp.ne.s32.totalorder %s127_s25, %s516_s16  ;;  %p525_p13 = scmp.lt.s32.totalorder %s516_s16, %s516_s16 }
  0x27   : > { %p519_p8 = pnand %p517_p9, %p505_p10  ;;  %p526_p4 = por %p525_p13, %p524_p3 }
  0x29   : > { %p520_p7 = pneg %p519_p8 }
  0x2b   : > { %p527_p6 = pnand %p526_p4, %p520_p7 }
  0x2d   : > { %530 = shalt.err (!%p527_p6)
}
  0x2e   : > { %429 = dma.hbm_to_vmem [thread:$0]  (!%p748_p2), %s890_s0, 64, %s127_s25, [#allocation3]  }
  0x2f   : > { %p908_p9 = scmp.ne.s32.totalorder %s907_s29, 0  ;;  %s415_s3 = smul.u32 48, %s137_s30 }
  0x30   : > { %s416_s5 = smul.u32 768, %s643_s13  ;;  %s793_s29 = scalar_lea.sflag [#allocation6], %s137_s30 }
  0x31   : > { %s922_s28 = smov (%p908_p9, %s31_s28), 0  ;;  %s141_s8 = scalar_lea.vmem [#allocation5], %s415_s3 }
  0x32   : > { %s56_s4 = ssub.s32 %s643_s13, %s922_s28  ;;  %s784_s7 = scalar_lea.hbm %s891_s1, %s416_s5 }
  0x33   : > { %p59_p3 = scmp.eq.s32.totalorder %s56_s4, 0  ;;  %s150_s15 = sshll.u32 %s141_s8, 4  ;;  %s791_s15 = int_to_ptr.vmem [resolvable:$true] %s150_s15 }
  0x34   : > { %s531_s16 = scalar_lea.hbm %s784_s7, 768  ;;  %p909_p8 = scmp.ne.s32.totalorder %s905_s26, 0 }
  0x35   : > { %s789_s25 = scalar_select %p59_p3, %s635_s11, %s61_s17  }
  0x36   : > { %p532_p7 = scmp.ne.s32.totalorder %s784_s7, %s531_s16  ;;  %p533_p12 = pneg %p909_p8 }
  0x37   : > { %s536_s3 = scalar_lea.hbm %s891_s1, 1536  ;;  %p537_p2 = scmp.lt.u32.totalorder %s784_s7, %s891_s1 }
  0x38   : > { %p534_p13 = pnand %p533_p12, %p532_p7  ;;  %p538_p6 = scmp.lt.u32.totalorder %s536_s3, %s531_s16 }
  0x39   : > { %p540_p10 = scmp.lt.u32.totalorder %s531_s16, %s784_s7 }
  0x3a   : > { %p535_p4 = pneg %p534_p13  ;;  %p539_p5 = por %p538_p6, %p537_p2 }
  0x3c   : > { %p541_p11 = por %p540_p10, %p539_p5 }
  0x3e   : > { %p542_p1 = pnand %p541_p11, %p535_p4 }
  0x40   : > { %545 = shalt.err (!%p542_p1)
}
  0x41   : > { %s546_s17 = scalar_lea.vmem %s791_s15, 768  ;;  %s650_s30 = smov [#allocation5]  }
  0x42   : > { %p547_p0 = scmp.ne.s32.totalorder %s791_s15, %s546_s17  ;;  %s551_s27 = sshll.u32 %s650_s30, 4  ;;  %s552_s27 = int_to_ptr.vmem [resolvable:$false] %s551_s27 }
  0x43   : > { %s553_s6 = scalar_lea.vmem %s552_s27, 1536  ;;  %p554_p7 = scmp.lt.s32.totalorder %s791_s15, %s552_s27 }
  0x44   : > { %p549_p9 = pnand %p547_p0, %p533_p12  ;;  %p555_p13 = scmp.lt.s32.totalorder %s553_s6, %s546_s17 }
  0x46   : > { %p550_p3 = pneg %p549_p9  ;;  %p556_p2 = por %p555_p13, %p554_p7 }
  0x48   : > { %p557_p6 = pnand %p556_p2, %p550_p3 }
  0x4a   : > { %560 = shalt.err (!%p557_p6)
}
  0x4b   : > { %s651_s8 = smov 128   ;;  %s652_s16 = smov 8  }
  0x4c   : > { %433 = dma.hbm_to_vmem [thread:$0]  (!%p909_p8), %s784_s7, 768, %s791_s15, %s793_s29, %s651_s8, %s651_s8, %s652_s16  }
  0x4d   : > { %p910_p12 = scmp.ne.s32.totalorder %s904_s23, 0 }
  0x4e   : > { %p911_p4 = scmp.ne.s32.totalorder (!%p910_p12), %s899_s18, 0 }
  0x4f   : > { %162 = sbr.rel (%p910_p12) target bundleno = 333 (0x14d), region = 28 }
  0x56   : > { %614 = dma.done.wait (%p911_p4), [#allocation3], 64  }
  0x57   : > { %616 = vsyncadd (%p911_p4), [#allocation3], 4294967232  ;;  %s828_s19 = sand.u32 1, %s631_s10   ;;  %p912_p5 = scmp.ne.s32.totalorder %s901_s20, 0 }
  0x58   : > { %s417_s24 = smul.u32 48, %s828_s19  ;;  %s169_s3 = scalar_lea.sflag [#allocation6], %s828_s19 }
  0x5a   : > { %s172_s4 = scalar_lea.vmem [#allocation5], %s417_s24 }
  0x5b   : > { %618 = dma.done.wait (%p912_p5), %s169_s3, 768  }
  0x5c   : > { %620 = vsyncadd (%p912_p5), %s169_s3, 4294966528  ;;  %v653_v0 = vmov 0   ;;  %v494_v1 = vld [vmem:[%s172_s4 + $0x4] ss:$8 sps:$4 sm:$0xff]   ;;  %v496_v2 = vld [vmem:[%s172_s4] ss:$8 sps:$4 sm:$0xff]  }
  0x5d   : > { %269 = vmatprep.mubr.bf16.mxu0 %v653_v0  ;;  %237 = vmatprep.subr.bf16.mxu0 %v494_v1  ;;  %v497_v3 = vld [vmem:[%s172_s4 + $0x14] ss:$8 sps:$4 sm:$0xff]   ;;  %v499_v4 = vld [vmem:[%s172_s4 + $0x10] ss:$8 sps:$4 sm:$0xff]   ;;  %v500_v5 = vld [vmem:[%s172_s4 + $0x24] ss:$8 sps:$4 sm:$0xff]  }
  0x5e   : > { %238 = vmatpush1.bf16.msra.mxu0 %v496_v2  ;;  %v502_v6 = vld [vmem:[%s172_s4 + $0x20] ss:$8 sps:$4 sm:$0xff]   ;;  %v196_v7 = vld [vmem:[#allocation2] sm:$0xf]  ;;  %vm233_vm0 = vcmask 392192   ;;  %s401_s18 = sshll.u32 %s828_s19, 4 }
  0x5f   : > { %239 = vmatprep.subr.bf16.mxu0 %v497_v3  ;;  %s192_s20 = scalar_lea.vmem [#allocation7], %s401_s18  ;;  %s414_s26 = sshll.u32 %s639_s12, 8 }
  0x60   : > { %s297_s23 = sshll.u32 %s192_s20, 4  ;;  %s843_s29 = scalar_lea.hbm %s892_s2, %s414_s26  ;;  %s838_s23 = int_to_ptr.vmem [resolvable:$true] %s297_s23 }
  0x61   : > { %s281_s5 = scalar_lea.sflag [#allocation4], %s828_s19  ;;  %s561_s17 = scalar_lea.vmem %s838_s23, 256 }
  0x62   : > { %240 = vmatpush1.bf16.msra.mxu0 %v499_v4  ;;  %p562_p8 = scmp.ne.s32.totalorder %s838_s23, %s561_s17  ;;  %p913_p10 = scmp.ne.s32.totalorder %s902_s21, 0 }
  0x63   : > { %241 = vmatprep.subr.bf16.mxu0 %v500_v5  ;;  %s654_s12 = smov [#allocation7]  }
  0x64   : > { %p563_p11 = pnand %p562_p8, %p913_p10  ;;  %s565_s30 = sshll.u32 %s654_s12, 4  ;;  %s566_s30 = int_to_ptr.vmem [resolvable:$false] %s565_s30 }
  0x65   : > { %s567_s27 = scalar_lea.vmem %s566_s30, 512  ;;  %p568_p0 = scmp.lt.s32.totalorder %s838_s23, %s566_s30 }
  0x66   : > { %242 = vmatpush1.bf16.msra.mxu0 %v502_v6  ;;  %p564_p1 = pneg %p563_p11  ;;  %p569_p9 = scmp.lt.s32.totalorder %s567_s27, %s561_s17 }
  0x68   : > { %p570_p3 = por %p569_p9, %p568_p0 }
  0x69   : > { %408 = vmatmul.mubr.msk.bf16.vlgmr.msra.gmra.mrb[0].mxu0 %vm233_vm0, %v196_v7 }
  0x6a   : > { %p571_p7 = pnand %p570_p3, %p564_p1 }
 0x13c   : > { %v271_v8 = vpop.f32.mrb[0].mxu0 }
 0x13d   : > { %278 = vst [vmem:[%s192_s20] sm:$0xff] %v271_v8  ;;  %v273_v9 = vpop.f32.mrb[1].mxu0 }
 0x13e   : > { %279 = vst [vmem:[%s192_s20 + $0x8] sm:$0xff] %v273_v9  ;;  %v275_v10 = vpop.f32.mrb[2].mxu0 }
 0x13f   : > { %v276_v11 = vpop.f32.mrb[3].mxu0 }
 0x140   : > { %574 = shalt.err (!%p571_p7)
}
 0x141   : > { %s575_s6 = scalar_lea.hbm %s843_s29, 256  ;;  %s579_s19 = scalar_lea.hbm %s892_s2, 512 }
 0x142   : > { %p576_p13 = scmp.ne.s32.totalorder %s843_s29, %s575_s6  ;;  %p580_p12 = scmp.lt.u32.totalorder %s843_s29, %s892_s2 }
 0x143   : > { %p581_p4 = scmp.lt.u32.totalorder %s579_s19, %s575_s6  ;;  %p583_p8 = scmp.lt.u32.totalorder %s575_s6, %s843_s29 }
 0x144   : > { %p577_p2 = pnand %p576_p13, %p913_p10 }
 0x145   : > { %p582_p5 = por %p581_p4, %p580_p12 }
 0x146   : > { %p578_p6 = pneg %p577_p2 }
 0x147   : > { %p584_p11 = por %p583_p8, %p582_p5 }
 0x149   : > { %p585_p1 = pnand %p584_p11, %p578_p6 }
 0x14b   : > { %588 = shalt.err (!%p585_p1)
}
 0x14c   : > { %424 = dma.vmem_to_hbm [thread:$0]  (%p913_p10), %s838_s23, 256, %s843_s29, %s281_s5  }
 0x14d PF: > { %s309_s4 = sand.u32 1, %s627_s9   ;;  %p914_p0 = scmp.ne.s32.totalorder %s903_s22, 0 }
 0x14e   : > { %p915_p9 = scmp.ge.s32.totalorder %s647_s14, 2  ;;  %s310_s18 = scalar_lea.sflag [#allocation4], %s309_s4 }
 0x150   : > { %p435_p3 = pnand %p915_p9, %p914_p0 }
 0x152   : > { %622 = dma.done.wait (!%p435_p3), %s310_s18, 256  }
 0x153   : > { %624 = vsyncadd (!%p435_p3), %s310_s18, 4294967040  ;;  %s19_s14 = sadd.s32 1, %s647_s14   ;;  %s916_s9 = smov %s631_s10 }
 0x154   : > { %p16_p7 = scmp.ge.s32.totalorder %s19_s14, 4   ;;  %s917_s10 = smov %s635_s11 }
 0x155   : > { %s918_s11 = smov %s789_s25  ;;  %s919_s12 = smov %s643_s13 }
 0x156   : > { %s920_s13 = smov %s922_s28  ;;  %18 = sbr.rel (!%p16_p7) target bundleno = 7 (0x7), region = 78 }
 0x15d   :  { %315 = vsyncpa [#allocation3], 1 }
 0x15e   :  { %317 = vsyncpa [#allocation3 + $0x1], 1 }
 0x15f   :  { %318 = vsyncpa [#allocation6], 1 }
 0x160   :  { %320 = vsyncpa [#allocation6 + $0x1], 1 }
 0x161   :  { %321 = vsyncpa [#allocation4], 1 }
 0x162   :  { %323 = vsyncpa [#allocation4 + $0x1], 1 }

</bundles_post_ra>
